<compile_context>
chip_gen: v6e
topology: v6e:2x2x1
jax: 0.10.0
libtpu: 0.0.40
codegen_flags: <defaults>
</compile_context>

<pallas_src>
import functools

import jax
import jax.numpy as jnp
from jax.experimental import pallas as pl
from jax.experimental.pallas import tpu as pltpu

_IGNORE_INDEX = -100   # PyTorch F.nll_loss default
_PACK = 8              # original rows packed per sublane row


def _nll_packed_kernel(num_classes, expander_ref, pred_ref, tgt_ref, out_ref):
    C = num_classes
    P = _PACK

    pred = pred_ref[...].astype(jnp.float32)          # (TM/8, P*C) log-probs
    tgt = tgt_ref[...]                                 # (TM/8, P)   int32 labels

    valid = tgt != _IGNORE_INDEX                       # (TM/8, P)

    # Per-slot adjusted class index: slot*C + label, or an out-of-range
    # sentinel (P*C) for ignored/padded rows. Tiny (TM/8, 8) VPU work.
    slot = jax.lax.broadcasted_iota(jnp.int32, tgt.shape, 1)
    tgt_adj = jnp.where(valid, tgt + slot * C, P * C).astype(jnp.float32)

    # Broadcast each of the 8 labels across its C-lane group with a small 0/1
    # matmul (MXU slot, keeps the VPU free): tgt_b[r, l] = tgt_adj[r, l // C].
    # All values are small integers (<= 8*C = 104), exactly representable even
    # under reduced matmul precision, so the equality compare below is exact.
    tgt_b = jnp.dot(tgt_adj, expander_ref[...],
                    preferred_element_type=jnp.float32)   # (TM/8, P*C)

    lane = jax.lax.broadcasted_iota(jnp.int32, pred.shape, 1)
    picked = jnp.where(lane.astype(jnp.float32) == tgt_b, pred, 0.0)

    part_sum = jnp.sum(picked)
    part_cnt = jnp.sum(valid.astype(jnp.float32))

    # Single lane-dense output block: lane 0 = partial sum, lane 1 = count.
    out_lane = jax.lax.broadcasted_iota(jnp.int32, out_ref.shape, 2)
    out_ref[...] = jnp.where(out_lane == 0, part_sum,
                             jnp.where(out_lane == 1, part_cnt, 0.0))


def _round_up(x, m):
    return ((x + m - 1) // m) * m


def nll_loss_pallas(pred, target, *, tile_rows=32768):
    """pred: (R, C) float log-probs, target: (R,) int labels -> scalar f32 loss."""
    R, C = pred.shape
    P = _PACK
    align = 8 * P  # 64: keeps the packed block's sublane dim a multiple of 8

    r_up = _round_up(R, align)
    tm = min(_round_up(tile_rows, align), r_up)
    # v7x megacore: for large inputs keep >= 2 grid steps so both TensorCores
    # get work on the "parallel" axis. No-op for small inputs / 1-TC chips.
    if r_up >= 8192:
        tm = min(tm, _round_up(pl.cdiv(r_up, 2), align))

    num_tiles = pl.cdiv(r_up, tm)
    r_pad = num_tiles * tm

    tgt = target.astype(jnp.int32)
    if r_pad > R:
        # Padding labels with ignore_index removes any in-kernel row mask.
        pred = jnp.pad(pred, ((0, r_pad - R), (0, 0)))
        tgt = jnp.pad(tgt, (0, r_pad - R), constant_values=_IGNORE_INDEX)

    # Row-major (free) lane packing: 8 original rows per sublane row.
    pred_packed = pred.reshape(r_pad // P, P * C)
    tgt_packed = tgt.reshape(r_pad // P, P)

    # Constant 0/1 expander: expander[s, l] = 1 iff l // C == s.
    lane_ids = jnp.arange(P * C, dtype=jnp.int32)[None, :]
    slot_ids = jnp.arange(P, dtype=jnp.int32)[:, None]
    expander = (lane_ids // C == slot_ids).astype(jnp.float32)   # (P, P*C)

    tm8 = tm // P
    kernel = functools.partial(_nll_packed_kernel, C)
    partials = pl.pallas_call(
        kernel,
        out_shape=jax.ShapeDtypeStruct((num_tiles, 1, 128), jnp.float32),
        grid_spec=pltpu.PrefetchScalarGridSpec(
            num_scalar_prefetch=0,
            grid=(num_tiles,),
            in_specs=[
                pl.BlockSpec((P, P * C), lambda i: (0, 0)),     # expander (resident)
                pl.BlockSpec((tm8, P * C), lambda i: (i, 0)),   # packed pred
                pl.BlockSpec((tm8, P), lambda i: (i, 0)),       # packed target
            ],
            out_specs=pl.BlockSpec((1, 1, 128), lambda i: (i, 0, 0)),
        ),
        compiler_params=pltpu.CompilerParams(
            # Each step writes its own output block -> no cross-step deps; the
            # row-tile axis is fully parallel (megacore-shardable on v7x).
            dimension_semantics=("parallel",),
            vmem_limit_bytes=32 * 1024 * 1024,
        ),
    )(expander, pred_packed, tgt_packed)

    total = jnp.sum(partials[:, 0, 0])
    count = jnp.sum(partials[:, 0, 1])
    # NOTE: if every label is ignore_index PyTorch returns NaN (0/0); the
    # max(count, 1) guard returns 0 instead (intentional behavioral difference).
    return -total / jnp.maximum(count, 1.0)


if __name__ == "__main__":
    key = jax.random.PRNGKey(0)
    k1, k2, k3, k4 = jax.random.split(key, 4)

    # Case 1: small semseg-like shape (batch=2, points=64, 13 classes) -> one step.
    B, N, C = 2, 64, 13
    R = B * N
    logits = jax.random.normal(k1, (R, C), dtype=jnp.float32)
    pred = jax.nn.log_softmax(logits, axis=-1)
    target = jax.random.randint(k2, (R,), 0, C, dtype=jnp.int32)

    loss = jax.block_until_ready(nll_loss_pallas(pred, target))
    ref = -jnp.mean(pred[jnp.arange(R), target])
    assert jnp.allclose(loss, ref, atol=1e-5, rtol=1e-5), (loss, ref)

    # Case 2: non-tile-multiple row count (padded edge tile), multi-step grid,
    # and ignore_index labels.
    R2 = 2000
    logits2 = jax.random.normal(k3, (R2, C), dtype=jnp.float32)
    pred2 = jax.nn.log_softmax(logits2, axis=-1)
    target2 = jax.random.randint(k4, (R2,), 0, C, dtype=jnp.int32)
    target2 = target2.at[::7].set(_IGNORE_INDEX)

    loss2 = jax.block_until_ready(nll_loss_pallas(pred2, target2, tile_rows=512))
    keep = target2 != _IGNORE_INDEX
    gathered = pred2[jnp.arange(R2), jnp.clip(target2, 0, C - 1)]
    ref2 = -jnp.sum(jnp.where(keep, gathered, 0.0)) / jnp.sum(keep).astype(jnp.float32)
    assert jnp.allclose(loss2, ref2, atol=1e-5, rtol=1e-5), (loss2, ref2)

    print("KERNEL_OK")
</pallas_src>

<mosaic_0001>
module attributes {stable_mosaic.version = 11 : i64} {
  func.func @_nll_packed_kernel(%arg0: i32, %arg1: memref<8x104xf32, #tpu.memory_space<vmem>>, %arg2: memref<16x104xf32, #tpu.memory_space<vmem>>, %arg3: memref<16x8xi32, #tpu.memory_space<vmem>>, %arg4: memref<1x1x128xf32, #tpu.memory_space<vmem>>) attributes {dimension_semantics = [#tpu.dimension_semantics<parallel>], iteration_bounds = array<i64: 1>, scalar_prefetch = 0 : i64, scratch_operands = 0 : i64, tpu.core_type = #tpu.core_type<tc>, window_params = [{pipeline_mode = #tpu.pipeline_mode<synchronous>, transform_indices = @transform_0, window_bounds = array<i64: 8, 104>}, {transform_indices = @transform_1, window_bounds = array<i64: 16, 104>}, {transform_indices = @transform_2, window_bounds = array<i64: 16, 8>}, {transform_indices = @transform_3, window_bounds = array<i64: 1, 1, 128>}]} {
    %c0 = arith.constant 0 : index
    %c0_0 = arith.constant 0 : index
    %0 = vector.load %arg2[%c0, %c0_0] : memref<16x104xf32, #tpu.memory_space<vmem>>, vector<16x104xf32>
    %c0_1 = arith.constant 0 : index
    %c0_2 = arith.constant 0 : index
    %1 = vector.load %arg3[%c0_1, %c0_2] : memref<16x8xi32, #tpu.memory_space<vmem>>, vector<16x8xi32>
    %c-100_i32 = arith.constant -100 : i32
    %2 = vector.broadcast %c-100_i32 : i32 to vector<16x8xi32>
    %3 = arith.cmpi ne, %1, %2 : vector<16x8xi32>
    %4 = tpu.iota {dimensions = array<i32: 1>} : vector<16x8xi32>
    %c13_i32 = arith.constant 13 : i32
    %5 = vector.broadcast %c13_i32 : i32 to vector<16x8xi32>
    %6 = arith.muli %4, %5 : vector<16x8xi32>
    %7 = arith.addi %1, %6 : vector<16x8xi32>
    %c104_i32 = arith.constant 104 : i32
    %8 = vector.broadcast %c104_i32 : i32 to vector<16x8xi32>
    %9 = arith.select %3, %7, %8 : vector<16x8xi1>, vector<16x8xi32>
    %10 = arith.sitofp %9 : vector<16x8xi32> to vector<16x8xf32>
    %c0_3 = arith.constant 0 : index
    %c0_4 = arith.constant 0 : index
    %11 = vector.load %arg1[%c0_3, %c0_4] : memref<8x104xf32, #tpu.memory_space<vmem>>, vector<8x104xf32>
    %cst = arith.constant dense<0.000000e+00> : vector<16x104xf32>
    %12 = tpu.matmul %10, %11, %cst {dimension_numbers = #tpu.dot_dimension_numbers<[1], [0], [0], [1], [0, 0, 1, 1], [], []>} : vector<16x8xf32>, vector<8x104xf32>, vector<16x104xf32> -> vector<16x104xf32>
    %13 = tpu.iota {dimensions = array<i32: 1>} : vector<16x104xi32>
    %14 = arith.sitofp %13 : vector<16x104xi32> to vector<16x104xf32>
    %15 = arith.cmpf oeq, %14, %12 : vector<16x104xf32>
    %cst_5 = arith.constant 0.000000e+00 : f32
    %16 = vector.broadcast %cst_5 : f32 to vector<16x104xf32>
    %17 = arith.select %15, %0, %16 : vector<16x104xi1>, vector<16x104xf32>
    %18 = vector.shape_cast %17 : vector<16x104xf32> to vector<1x16x104xf32>
    %cst_6 = arith.constant dense<0.000000e+00> : vector<1xf32>
    %19 = vector.multi_reduction <add>, %18, %cst_6 [1, 2] : vector<1x16x104xf32> to vector<1xf32>
    %20 = vector.shape_cast %19 : vector<1xf32> to vector<1x1x1xf32>
    %21 = vector.extract %20[0, 0, 0] : f32 from vector<1x1x1xf32>
    %22 = arith.extui %3 : vector<16x8xi1> to vector<16x8xi32>
    %23 = arith.sitofp %22 : vector<16x8xi32> to vector<16x8xf32>
    %24 = vector.shape_cast %23 : vector<16x8xf32> to vector<1x16x8xf32>
    %cst_7 = arith.constant dense<0.000000e+00> : vector<1xf32>
    %25 = vector.multi_reduction <add>, %24, %cst_7 [1, 2] : vector<1x16x8xf32> to vector<1xf32>
    %26 = vector.shape_cast %25 : vector<1xf32> to vector<1x1x1xf32>
    %27 = vector.extract %26[0, 0, 0] : f32 from vector<1x1x1xf32>
    %28 = tpu.iota {dimensions = array<i32: 2>} : vector<1x1x128xi32>
    %c0_i32 = arith.constant 0 : i32
    %29 = vector.broadcast %c0_i32 : i32 to vector<1x1x128xi32>
    %30 = arith.cmpi eq, %28, %29 : vector<1x1x128xi32>
    %c1_i32 = arith.constant 1 : i32
    %31 = vector.broadcast %c1_i32 : i32 to vector<1x1x128xi32>
    %32 = arith.cmpi eq, %28, %31 : vector<1x1x128xi32>
    %cst_8 = arith.constant 0.000000e+00 : f32
    %33 = vector.broadcast %27 : f32 to vector<1x1x128xf32>
    %34 = vector.broadcast %cst_8 : f32 to vector<1x1x128xf32>
    %35 = arith.select %32, %33, %34 : vector<1x1x128xi1>, vector<1x1x128xf32>
    %36 = vector.broadcast %21 : f32 to vector<1x1x128xf32>
    %37 = arith.select %30, %36, %35 : vector<1x1x128xi1>, vector<1x1x128xf32>
    %c0_9 = arith.constant 0 : index
    %c0_10 = arith.constant 0 : index
    %c0_11 = arith.constant 0 : index
    %38 = vector.load %arg4[%c0_9, %c0_10, %c0_11] : memref<1x1x128xf32, #tpu.memory_space<vmem>>, vector<1x1x128xf32>
    tpu.vector_store %arg4[%c0_9, %c0_10, %c0_11], %37 {strides = array<i32>} : memref<1x1x128xf32, #tpu.memory_space<vmem>>, vector<1x1x128xf32>,
    return
  }
  func.func @transform_0(%arg0: i32) -> (i32, i32) {
    %c0_i32 = arith.constant 0 : i32
    %c0_i32_0 = arith.constant 0 : i32
    %c0_i32_1 = arith.constant 0 : i32
    return %c0_i32, %c0_i32_0 : i32, i32
  }
  func.func @transform_1(%arg0: i32) -> (i32, i32) {
    %c0_i32 = arith.constant 0 : i32
    %c0_i32_0 = arith.constant 0 : i32
    return %arg0, %c0_i32 : i32, i32
  }
  func.func @transform_2(%arg0: i32) -> (i32, i32) {
    %c0_i32 = arith.constant 0 : i32
    %c0_i32_0 = arith.constant 0 : i32
    return %arg0, %c0_i32 : i32, i32
  }
  func.func @transform_3(%arg0: i32) -> (i32, i32, i32) {
    %c0_i32 = arith.constant 0 : i32
    %c0_i32_0 = arith.constant 0 : i32
    %c0_i32_1 = arith.constant 0 : i32
    return %arg0, %c0_i32, %c0_i32_0 : i32, i32, i32
  }
}

</mosaic_0001>

<bundles_post_ra>
// kernel: tpu_custom_call.1
= control target key start
LH: loop header
LB: loop body
LE: loop exit
PB: predicated region body
PF: predicated region fallthrough
CT: control target
= control target key end

     0   :  { %v21_v1 = vlaneseq  ;;  %s256_s0 = inlined_call_operand.vmem [shape: f32[8,104], index: 0, kind: input, shape index: {}]   ;;  %s257_s1 = inlined_call_operand.vmem [shape: f32[16,104], index: 1, kind: input, shape index: {}]   ;;  %s258_s2 = inlined_call_operand.vmem [shape: s32[16,8], index: 2, kind: input, shape index: {}]   ;;  %s259_s3 = inlined_call_operand.hbm [shape: f32[1,1,128], index: 3, kind: output, shape index: {}]  }
   0x1   :  { %v30_v0 = vld [vmem:[%s256_s0] sm:$0xff] }
   0x2   :  { %175 = vmatprep.subr.mxu0 %v30_v0 }
   0x3   :  { %8 = vsyncpa [#allocation3], 0  ;;  %176 = vmatpush3.msra.mxu0 %v30_v0  ;;  %v17_v2 = vld [vmem:[%s258_s2] sm:$0xff]  ;;  %v18_v3 = vld [vmem:[%s258_s2 + $0x8] sm:$0xff]  ;;  %v22_v4 = vand.u32 127, %v21_v1  ;;  %vm31_vm2 = vcmask 64512  }
   0x4   :  { %vm19_vm0 = vcmp.ne.s32.totalorder %v17_v2, 4294967196  ;;  %vm20_vm1 = vcmp.ne.s32.totalorder %v18_v3, 4294967196  ;;  %v16_v13 = vld [vmem:[%s257_s1 + $0x8] sm:$0xff]  ;;  %v15_v15 = vld [vmem:[%s257_s1] sm:$0xff]  ;;  %vm118_vm4 = vcmask 850944   ;;  %v208_v18 = vmov 0.0  }
   0x5   :  { %v23_v5 = vmul.u32 13, %v22_v4  ;;  %v113_v12 = vcvt.s32.f32 %v22_v4  ;;  %v170_v19 = vsel %vm19_vm0, 1.0, %v208_v18  ;;  %v171_v20 = vsel %vm20_vm1, 1.0, %v208_v18  ;;  %s209_s20 = smov [#allocation2]  }
   0x6   :  { %v135_v24 = vsel %vm31_vm2, %v170_v19, 0.0  ;;  %v136_v25 = vsel %vm31_vm2, %v171_v20, 0.0  ;;  %vm148_vm6 = vcmp.eq.s32.totalorder %v22_v4, 1  ;;  %s160_s21 = sshll.u32 %s209_s20, 4  ;;  %vm147_vm7 = vcmp.eq.s32.totalorder %v22_v4, 0  ;;  %s161_s21 = int_to_ptr.vmem [resolvable:$true] %s160_s21 }
   0x7   :  { %v24_v6 = vadd.s32 %v23_v5, %v17_v2  ;;  %v25_v7 = vadd.s32 %v23_v5, %v18_v3  ;;  %v137_v27 = vadd.f32 %v136_v25, %v135_v24  ;;  %s186_s23 = scalar_lea.vmem %s161_s21, 16  ;;  %s190_s24 = scalar_lea.vmem %s161_s21, 32 }
   0x8   :  { %p187_p0 = scmp.ne.s32.totalorder %s161_s21, %s186_s23  ;;  %p191_p1 = scmp.lt.s32.totalorder %s161_s21, %s161_s21 }
   0x9   :  { %v26_v8 = vsel %vm19_vm0, %v24_v6, 104  ;;  %v27_v9 = vsel %vm20_vm1, %v25_v7, 104  ;;  %p192_p2 = scmp.lt.s32.totalorder %s190_s24, %s186_s23 }
   0xa   :  { %v28_v10 = vcvt.s32.f32 %v26_v8  ;;  %v29_v11 = vcvt.s32.f32 %v27_v9 }
   0xb   :  { %p193_p3 = por %p192_p2, %p191_p1 }
   0xc   :  { %177 = vmatprep.mubr.msk.f32.mxu0 %vm31_vm2, %v28_v10 }
   0xd   :  { %178 = vmatmul.mubr.msk.f32.vlgmr.msra.gmra.mxu0 %vm31_vm2, %v29_v11  ;;  %p194_p4 = pnand %p193_p3, %p187_p0 }
  0xcd   :  { %v179_v14 = vpop.f32.mrf.mxu0 }
  0xce   :  { %vm115_vm3 = vcmp.eq.f32.partialorder %v113_v12, %v179_v14 }
  0xcf   :  { %v117_v16 = vsel %vm115_vm3, %v16_v13, 0.0  ;;  %v104_v17 = vpop.f32.mrf.mxu0 }
  0xd0   :  { %vm114_vm5 = vcmp.eq.f32.partialorder %v113_v12, %v104_v17  ;;  %v120_v23 = vsel %vm118_vm4, %v117_v16, 0.0 }
  0xd1   :  { %v116_v21 = vsel %vm114_vm5, %v15_v15, 0.0 }
  0xd2   :  { %v119_v22 = vsel %vm118_vm4, %v116_v21, 0.0 }
  0xd3   :  { %v121_v26 = vadd.f32 %v120_v23, %v119_v22 }
  0xd5   :  { %122 = vadd.xlane.f32.xlu0 %v121_v26 }
  0xd9   :  { %138 = vadd.xlane.f32.xlu0 %v137_v27 }
 0x15e   :  { %v123_v28 = vpop.xlane.xlu0 %122 }
 0x15f   :  { %v124_v29 = vrot.slane %v123_v28, 4 }
 0x161   :  { %v125_v30 = vadd.f32 %v124_v29, %v123_v28 }
 0x162   :  { %v139_v31 = vpop.xlane.xlu0 %138 }
 0x163   :  { %v126_v32 = vrot.slane %v125_v30, 2  ;;  %v140_v33 = vrot.slane %v139_v31, 4 }
 0x165   :  { %v141_v34 = vadd.f32 %v140_v33, %v139_v31  ;;  %v127_v35 = vadd.f32 %v126_v32, %v125_v30 }
 0x167   :  { %v142_v36 = vrot.slane %v141_v34, 2  ;;  %v128_v37 = vrot.slane %v127_v35, 1 }
 0x169   :  { %v143_v38 = vadd.f32 %v142_v36, %v141_v34  ;;  %v129_v39 = vadd.f32 %v128_v37, %v127_v35 }
 0x16b   :  { %180 = vpush %v129_v39  ;;  %v144_v40 = vrot.slane %v143_v38, 1 }
 0x16d   :  { %v145_v41 = vadd.f32 %v144_v40, %v143_v38 }
 0x16f   :  { %182 = vpush %v145_v41 }
 0x19c   :  { %s181_s1 = spop %180 }
 0x19d   :  { %v151_v43 = vstv %s181_s1 }
 0x1a0   :  { %s183_s22 = spop %182 }
 0x1a1   :  { %v149_v42 = vstv %s183_s22 }
 0x1a2   :  { %v150_v44 = vsel %vm148_vm6, %v149_v42, 0.0 }
 0x1a3   :  { %v152_v45 = vsel %vm147_vm7, %v151_v43, %v150_v44 }
 0x1a4   :  { %153 = vst [vmem:[#allocation2] sm:$0x1] %v152_v45 }
 0x1a5   :  { %197 = shalt.err (!%p194_p4)
}
 0x1a6   :  { %163 = dma.vmem_to_hbm [thread:$0]  %s161_s21, 16, %s259_s3, [#allocation3]  }
 0x1a7   :  { %206 = dma.done.wait [#allocation3], 16  }
 0x1a8   :  { %207 = vsyncadd [#allocation3], 4294967280 }
 0x1a9   :  { %167 = vsyncpa [#allocation3], 1 }

</bundles_post_ra>
